<compile_context>
chip_gen: v7x
topology: tpu7x:2x2x1
jax: 0.10.0
libtpu: 0.0.40
codegen_flags: <defaults>
</compile_context>

<pallas_src>
import jax
import jax.numpy as jnp
from jax.experimental import pallas as pl
from jax.experimental.pallas import tpu as pltpu

_LANES = 128


def _squared_relu_kernel(x_ref, o_ref):
    x = x_ref[...]
    r = jnp.maximum(x, jnp.zeros_like(x))
    o_ref[...] = r * r


def _choose_tiles(rows, cols, dtype, target_tile_bytes):
    """Pick (row_tile, col_tile) so one block is ~target_tile_bytes and layout-legal."""
    itemsize = jnp.dtype(dtype).itemsize
    # Sublane multiple: 8 for 32-bit, 16 for bf16, 32 for int8/fp8.
    sub = max(8, 32 // max(1, itemsize))

    # Column tile: keep the full lane-dense width unless even one sublane group
    # of the full width blows the budget (then tile columns in multiples of 128).
    if cols * sub * itemsize <= target_tile_bytes or cols <= _LANES:
        col_tile = cols
    else:
        col_tile = ((target_tile_bytes // (sub * itemsize)) // _LANES) * _LANES
        col_tile = max(_LANES, min(col_tile, cols))

    # Row tile: as many sublane groups as fit in the budget.
    row_tile = target_tile_bytes // max(1, col_tile * itemsize)
    row_tile = max(sub, (row_tile // sub) * sub)
    if row_tile >= rows:
        row_tile = rows  # full extent is always a legal block dim
    return row_tile, col_tile


def _run_2d(x2d, *, donate, target_tile_bytes):
    rows, cols = x2d.shape
    dtype = x2d.dtype
    itemsize = jnp.dtype(dtype).itemsize
    row_tile, col_tile = _choose_tiles(rows, cols, dtype, target_tile_bytes)
    grid = (pl.cdiv(rows, row_tile), pl.cdiv(cols, col_tile))
    n = rows * cols

    kwargs = {}
    if donate:
        kwargs["input_output_aliases"] = {0: 0}

    return pl.pallas_call(
        _squared_relu_kernel,
        out_shape=jax.ShapeDtypeStruct((rows, cols), dtype),
        grid_spec=pltpu.PrefetchScalarGridSpec(
            num_scalar_prefetch=0,
            grid=grid,
            in_specs=[pl.BlockSpec((row_tile, col_tile), lambda i, j: (i, j))],
            out_specs=pl.BlockSpec((row_tile, col_tile), lambda i, j: (i, j)),
        ),
        compiler_params=pltpu.CompilerParams(
            dimension_semantics=("parallel", "parallel"),
        ),
        cost_estimate=pl.CostEstimate(
            flops=2 * n, transcendentals=0, bytes_accessed=2 * n * itemsize
        ),
        **kwargs,
    )(x2d)


def squared_relu(
    x: jax.Array,
    *,
    donate: bool = False,
    target_tile_bytes: int = 2 * 1024 * 1024,
) -> jax.Array:
    """Elementwise squared ReLU: relu(x)**2, computed in a Pallas TPU kernel."""
    orig_shape = x.shape
    n = x.size
    if n == 0:
        return x

    # ---- Fast path A: natural (..., D) layout with a lane-aligned last dim. Zero-copy view.
    if x.ndim >= 2 and orig_shape[-1] % _LANES == 0:
        cols = orig_shape[-1]
        rows = n // cols
        out = _run_2d(x.reshape(rows, cols), donate=donate,
                      target_tile_bytes=target_tile_bytes)
        return out.reshape(orig_shape)

    # ---- Fast path B: total size lane-aligned -> pad-free, wide lane-dense slab.
    if n % _LANES == 0:
        cols = _LANES
        for w in (4096, 2048, 1024, 512, 256):
            if n % w == 0:
                cols = w
                break
        out = _run_2d(x.reshape(n // cols, cols), donate=donate,
                      target_tile_bytes=target_tile_bytes)
        return out.reshape(orig_shape)

    # ---- Fallback (ragged size): pad the flat vector to a lane-dense slab, slice back.
    cols = _LANES if n < 1024 else 1024
    n_pad = (-n) % cols
    flat = jnp.pad(x.reshape(-1), (0, n_pad))
    out = _run_2d(flat.reshape((n + n_pad) // cols, cols), donate=False,
                  target_tile_bytes=target_tile_bytes)
    return out.reshape(-1)[:n].reshape(orig_shape)


def _reference(x):
    return jnp.square(jnp.maximum(x, jnp.zeros_like(x)))


def _check(y, x):
    ref = _reference(x)
    assert y.shape == x.shape and y.dtype == x.dtype
    assert jnp.allclose(
        y.astype(jnp.float32), ref.astype(jnp.float32), rtol=1e-6, atol=1e-6
    ), "mismatch vs reference"


if __name__ == "__main__":
    key = jax.random.PRNGKey(0)
    k1, k2, k3, k4 = jax.random.split(key, 4)

    # Fast path A: (batch, seq, hidden) with lane-aligned hidden.
    x_a = jax.random.normal(k1, (2, 8, 128), dtype=jnp.float32)
    y_a = squared_relu(x_a)
    jax.block_until_ready(y_a)
    _check(y_a, x_a)

    # Fast path B: hidden not lane-aligned but total size is (2*8*32 = 512).
    x_b = jax.random.normal(k2, (2, 8, 32), dtype=jnp.float32)
    y_b = squared_relu(x_b)
    jax.block_until_ready(y_b)
    _check(y_b, x_b)

    # bf16 path (checks sublane-multiple handling).
    x_c = jax.random.normal(k3, (4, 16, 256), dtype=jnp.bfloat16)
    y_c = squared_relu(x_c)
    jax.block_until_ready(y_c)
    _check(y_c, x_c)

    # Ragged fallback path.
    x_d = jax.random.normal(k4, (3, 5, 7), dtype=jnp.float32)
    y_d = squared_relu(x_d)
    jax.block_until_ready(y_d)
    _check(y_d, x_d)

    print("KERNEL_OK")
</pallas_src>

<mosaic_0001>
module attributes {stable_mosaic.version = 11 : i64} {
  func.func @_squared_relu_kernel(%arg0: i32, %arg1: i32, %arg2: memref<16x128xf32, #tpu.memory_space<vmem>>, %arg3: memref<16x128xf32, #tpu.memory_space<vmem>>) attributes {dimension_semantics = [#tpu.dimension_semantics<parallel>, #tpu.dimension_semantics<parallel>], iteration_bounds = array<i64: 1, 1>, scalar_prefetch = 0 : i64, scratch_operands = 0 : i64, tpu.core_type = #tpu.core_type<tc>, window_params = [{transform_indices = @transform_0, window_bounds = array<i64: 16, 128>}, {transform_indices = @transform_1, window_bounds = array<i64: 16, 128>}]} {
    %c0 = arith.constant 0 : index
    %c0_0 = arith.constant 0 : index
    %0 = vector.load %arg2[%c0, %c0_0] : memref<16x128xf32, #tpu.memory_space<vmem>>, vector<16x128xf32>
    %cst = arith.constant 0.000000e+00 : f32
    %1 = vector.broadcast %cst : f32 to vector<16x128xf32>
    %2 = arith.maximumf %0, %1 : vector<16x128xf32>
    %3 = arith.mulf %2, %2 : vector<16x128xf32>
    %c0_1 = arith.constant 0 : index
    %c0_2 = arith.constant 0 : index
    %4 = vector.load %arg3[%c0_1, %c0_2] : memref<16x128xf32, #tpu.memory_space<vmem>>, vector<16x128xf32>
    tpu.vector_store %arg3[%c0_1, %c0_2], %3 {strides = array<i32>} : memref<16x128xf32, #tpu.memory_space<vmem>>, vector<16x128xf32>,
    return
  }
  func.func @transform_0(%arg0: i32, %arg1: i32) -> (i32, i32) {
    %c0_i32 = arith.constant 0 : i32
    return %arg0, %arg1 : i32, i32
  }
  func.func @transform_1(%arg0: i32, %arg1: i32) -> (i32, i32) {
    %c0_i32 = arith.constant 0 : i32
    return %arg0, %arg1 : i32, i32
  }
}

</mosaic_0001>

<bundles_post_ra>
// kernel: tpu_custom_call.1
= control target key start
LH: loop header
LB: loop body
LE: loop exit
PB: predicated region body
PF: predicated region fallthrough
CT: control target
= control target key end

     0   :  { %6 = vsyncpa [#allocation3], 0  ;;  %s144_s0 = inlined_call_operand.hbm [shape: f32[16,128], index: 0, kind: input, shape index: {}]   ;;  %s145_s1 = inlined_call_operand.hbm [shape: f32[16,128], index: 1, kind: output, shape index: {}]  }
   0x1   :  { %7 = vsyncpa [#allocation4], 0  ;;  %s100_s6 = smov [#allocation2]   ;;  %s52_s10 = scalar_lea.hbm %s144_s0, 256 }
   0x2   :  { %s13_s7 = sshll.u32 %s100_s6, 4  ;;  %p53_p0 = scmp.ne.s32.totalorder %s144_s0, %s52_s10  ;;  %s14_s7 = int_to_ptr.vmem [resolvable:$true] %s13_s7 }
   0x3   :  { %p56_p1 = scmp.lt.u32.totalorder %s52_s10, %s144_s0 }
   0x5   :  { %p58_p2 = pnand %p56_p1, %p53_p0 }
   0x7   :  { %61 = shalt.err (!%p58_p2)
}
   0x8   :  { %s62_s15 = scalar_lea.vmem %s14_s7, 256  ;;  %p67_p4 = scmp.lt.s32.totalorder %s14_s7, %s14_s7 }
   0x9   :  { %p63_p3 = scmp.ne.s32.totalorder %s14_s7, %s62_s15  ;;  %p68_p5 = scmp.lt.s32.totalorder %s62_s15, %s62_s15 }
   0xb   :  { %p69_p6 = por %p68_p5, %p67_p4 }
   0xd   :  { %p70_p7 = pnand %p69_p6, %p63_p3 }
   0xf   :  { %73 = shalt.err (!%p70_p7)
}
  0x10   :  { %s101_s16 = smov 128   ;;  %s102_s17 = smov 8  }
  0x11   :  { %19 = dma.hbm_to_vmem [thread:$0]  %s144_s0, 256, %s14_s7, [#allocation3], %s101_s16, %s101_s16, %s102_s17  }
  0x12   :  { %96 = dma.done.wait [#allocation3], 256  }
  0x13   :  { %97 = vsyncadd [#allocation3], 4294967040  ;;  %v23_v0 = vld [vmem:[#allocation2] sm:$0xff]  ;;  %v24_v1 = vld [vmem:[#allocation2 + $0x8] sm:$0xff]  ;;  %s103_s20 = smov [#allocation5]  }
  0x14   :  { %s36_s21 = sshll.u32 %s103_s20, 4  ;;  %v25_v2 = vmax.f32 %v23_v0, 0.0  ;;  %v26_v3 = vmax.f32 %v24_v1, 0.0  ;;  %s37_s21 = int_to_ptr.vmem [resolvable:$true] %s36_s21 }
  0x15   :  { %s74_s22 = scalar_lea.vmem %s37_s21, 256  ;;  %p79_p9 = scmp.lt.s32.totalorder %s37_s21, %s37_s21 }
  0x16   :  { %v27_v4 = vmul.f32 %v25_v2, %v25_v2  ;;  %v28_v5 = vmul.f32 %v26_v3, %v26_v3  ;;  %p75_p8 = scmp.ne.s32.totalorder %s37_s21, %s74_s22  ;;  %p80_p10 = scmp.lt.s32.totalorder %s74_s22, %s74_s22 }
  0x18   :  { %29 = vst [vmem:[#allocation5] sm:$0xff] %v27_v4  ;;  %30 = vst [vmem:[#allocation5 + $0x8] sm:$0xff] %v28_v5  ;;  %p81_p11 = por %p80_p10, %p79_p9 }
  0x1a   :  { %p82_p12 = pnand %p81_p11, %p75_p8 }
  0x1c   :  { %85 = shalt.err (!%p82_p12)
}
  0x1d   :  { %s86_s24 = scalar_lea.hbm %s145_s1, 256 }
  0x1e   :  { %p87_p13 = scmp.ne.s32.totalorder %s145_s1, %s86_s24  ;;  %p90_p0 = scmp.lt.u32.totalorder %s86_s24, %s145_s1 }
  0x20   :  { %p92_p1 = pnand %p90_p0, %p87_p13 }
  0x22   :  { %95 = shalt.err (!%p92_p1)
}
  0x23   :  { %42 = dma.vmem_to_hbm [thread:$0]  %s37_s21, 256, %s145_s1, [#allocation4], %s101_s16, %s101_s16, %s102_s17  }
  0x24   :  { %98 = dma.done.wait [#allocation4], 256  }
  0x25   :  { %99 = vsyncadd [#allocation4], 4294967040 }
  0x26   :  { %46 = vsyncpa [#allocation3], 1 }
  0x27   :  { %47 = vsyncpa [#allocation4], 1 }

</bundles_post_ra>
